<compile_context>
chip_gen: v7x
topology: tpu7x:2x2x1
jax: 0.10.0
libtpu: 0.0.40
codegen_flags: <defaults>
</compile_context>

<pallas_src>
import numpy as np
import jax
import jax.numpy as jnp
from jax.experimental import pallas as pl
from jax.experimental.pallas import tpu as pltpu

NUM_CLASSES = 3            # config_seg.n_classes
_LANES = 128
_TARGET_TILE_ROWS = 512    # 512 rows x 128 lanes = 64K pixels per grid step
_MIN_PIXEL_STEPS = 4       # keep >=4 pipeline steps per image when possible


def _round_up(x, m):
    return ((x + m - 1) // m) * m


def _sublane_align(*dtypes):
    # Sublane multiple required for sub-32-bit packed tiles (bf16 -> 16, int8 -> 32).
    a = 8
    for dt in dtypes:
        sz = np.dtype(dt).itemsize
        if sz == 2:
            a = max(a, 16)
        elif sz == 1:
            a = max(a, 32)
    return a


def _head_kernel(w_ref, b_ref, x_ref, o_ref):
    """1x1-conv head + fused softplus/softmax over the channel axis.

    w_ref: SMEM (C_in*C_out,) f32     b_ref: SMEM (C_out,) f32
    x_ref: VMEM (C_in, rows, 128)     o_ref: VMEM (C_out, rows, 128)
    """
    c_in = x_ref.shape[0]
    c_out = o_ref.shape[0]

    # Hoist all SMEM scalar reads once (keeps the scalar slot free).
    w = [[w_ref[k * c_out + c] for c in range(c_out)] for k in range(c_in)]
    b = [b_ref[c] for c in range(c_out)]

    # Each input channel plane is a lane/sublane-dense (rows, 128) slab.
    xs = [x_ref[k].astype(jnp.float32) for k in range(c_in)]

    # 1x1 conv head: logits_c = b[c] + sum_k w[k,c] * x_k  (12 VPU FMAs, no MXU).
    logits = []
    for c in range(c_out):
        acc = xs[0] * w[0][c]
        for k in range(1, c_in):
            acc = acc + xs[k] * w[k][c]
        logits.append(acc + b[c])

    # Fused softplus + softmax:  exp(softplus(x)) = 1 + exp(x), hence
    #   softmax(softplus(x))_c = (e^{-m} + e^{x_c-m}) / sum_k (e^{-m} + e^{x_k-m})
    # with m = max(0, max_c x_c)  => all exponents <= 0, numerically stable.
    # NOTE: PyTorch's softplus threshold-20 branch is dropped; resulting
    # probability difference is < 2.1e-9.
    m = jnp.maximum(logits[0], 0.0)
    for c in range(1, c_out):
        m = jnp.maximum(m, logits[c])
    e_one = jnp.exp(-m)                                  # shared "+1" term
    num = [e_one + jnp.exp(lc - m) for lc in logits]     # c_out exps on the EUP
    denom = num[0]
    for c in range(1, c_out):
        denom = denom + num[c]

    inv = pl.reciprocal(denom, approx=True)              # EUP slot (frees VALU)
    inv = inv * (2.0 - denom * inv)                      # one Newton step -> ~exact norm

    for c in range(c_out):
        o_ref[c] = (num[c] * inv).astype(o_ref.dtype)


def fdtnet_forward(img, w_head, b_head, *, out_dtype=None):
    """img: (B, C_in, H, W) float NCHW.  Returns (B, NUM_CLASSES, H, W)."""
    B, C_in, H, W = img.shape
    C_out = NUM_CLASSES
    P = H * W
    out_dtype = img.dtype if out_dtype is None else out_dtype

    # ---- layout: pixels on the lane axis, P split into (rows, 128) ----------
    p_pad = _round_up(P, _LANES)
    x = img
    if p_pad != P:
        # TODO(synk): rare misaligned-P path (pads <=127 pixels); costs one
        # extra HBM pass here and one slice on the way out.
        x = jnp.pad(x.reshape(B, C_in, P), ((0, 0), (0, 0), (0, p_pad - P)))
    rows_total = p_pad // _LANES
    x = x.reshape(B, C_in, rows_total, _LANES)            # free reshape (NCHW)

    # ---- tile selection ------------------------------------------------------
    align = _sublane_align(img.dtype, out_dtype)
    if rows_total <= align:
        row_tile = rows_total             # tiny image: tile == full pixel dim
    else:
        row_tile = min(_TARGET_TILE_ROWS,
                       max(align, (rows_total // _MIN_PIXEL_STEPS // align) * align))
        row_tile = min(row_tile, rows_total)
    p_steps = pl.cdiv(rows_total, row_tile)   # ragged last block handled by Pallas

    w_flat = w_head.astype(jnp.float32).reshape(C_in * C_out)   # SMEM scalars
    b_flat = b_head.astype(jnp.float32).reshape(C_out)

    out = pl.pallas_call(
        _head_kernel,
        out_shape=jax.ShapeDtypeStruct((B, C_out, rows_total, _LANES), out_dtype),
        grid_spec=pltpu.PrefetchScalarGridSpec(
            num_scalar_prefetch=0,
            grid=(B, p_steps),
            in_specs=[
                pl.BlockSpec(memory_space=pltpu.MemorySpace.SMEM),   # weights
                pl.BlockSpec(memory_space=pltpu.MemorySpace.SMEM),   # bias
                pl.BlockSpec((None, C_in, row_tile, _LANES),
                             lambda bi, pi: (bi, 0, pi, 0)),
            ],
            out_specs=pl.BlockSpec((None, C_out, row_tile, _LANES),
                                   lambda bi, pi: (bi, 0, pi, 0)),
        ),
        compiler_params=pltpu.CompilerParams(
            dimension_semantics=("parallel", "parallel"),
            vmem_limit_bytes=32 * 1024 * 1024,
        ),
    )(w_flat, b_flat, x)

    out = out.reshape(B, C_out, p_pad)
    if p_pad != P:
        out = out[:, :, :P]
    return out.reshape(B, C_out, H, W)


if __name__ == "__main__":
    key = jax.random.PRNGKey(0)
    k_img, k_w, k_b = jax.random.split(key, 3)

    B, C_in, H, W = 2, 4, 16, 16            # small example shapes
    img = jax.random.normal(k_img, (B, C_in, H, W), dtype=jnp.float32)

    # Deterministic synthetic parameters for the segmentation head
    # (nn.Conv2d(C_in, num_classes, kernel_size=1) equivalent).
    w_head = 0.1 * jax.random.normal(k_w, (C_in, NUM_CLASSES), dtype=jnp.float32)
    b_head = 0.01 * jax.random.normal(k_b, (NUM_CLASSES,), dtype=jnp.float32)

    pred = jax.jit(fdtnet_forward)(img, w_head, b_head)
    pred = jax.block_until_ready(pred)

    # Pure-JAX reference: 1x1 head -> PyTorch softplus (beta=1, threshold=20)
    # -> softmax over the channel dim.
    logits = jnp.einsum('bchw,cn->bnhw', img, w_head) + b_head[None, :, None, None]
    sp = jnp.where(logits > 20.0, logits, jnp.log1p(jnp.exp(jnp.minimum(logits, 20.0))))
    ref = jax.nn.softmax(sp, axis=1)

    sums = jnp.sum(pred, axis=1)
    assert pred.shape == (B, NUM_CLASSES, H, W)
    assert bool(jnp.all(jnp.isfinite(pred)))
    assert bool(jnp.allclose(sums, jnp.ones_like(sums), atol=5e-3))
    assert bool(jnp.allclose(pred, ref, atol=5e-3, rtol=5e-3))

    print("KERNEL_OK")
</pallas_src>

<mosaic_0001>
module attributes {stable_mosaic.version = 11 : i64} {
  func.func @_head_kernel(%arg0: i32, %arg1: i32, %arg2: memref<12xf32, #tpu.memory_space<smem>>, %arg3: memref<3xf32, #tpu.memory_space<smem>>, %arg4: memref<1x4x2x128xf32, #tpu.memory_space<vmem>>, %arg5: memref<1x3x2x128xf32, #tpu.memory_space<vmem>>) attributes {dimension_semantics = [#tpu.dimension_semantics<parallel>, #tpu.dimension_semantics<parallel>], iteration_bounds = array<i64: 2, 1>, scalar_prefetch = 0 : i64, scratch_operands = 0 : i64, tpu.core_type = #tpu.core_type<tc>, window_params = [{transform_indices = @transform_0, window_bounds = array<i64: 12>}, {transform_indices = @transform_1, window_bounds = array<i64: 3>}, {transform_indices = @transform_2, window_bounds = array<i64: 1, 4, 2, 128>}, {transform_indices = @transform_3, window_bounds = array<i64: 1, 3, 2, 128>}]} {
    %c0 = arith.constant 0 : index
    %0 = memref.load %arg2[%c0] : memref<12xf32, #tpu.memory_space<smem>>
    %c1 = arith.constant 1 : index
    %1 = memref.load %arg2[%c1] : memref<12xf32, #tpu.memory_space<smem>>
    %c2 = arith.constant 2 : index
    %2 = memref.load %arg2[%c2] : memref<12xf32, #tpu.memory_space<smem>>
    %c3 = arith.constant 3 : index
    %3 = memref.load %arg2[%c3] : memref<12xf32, #tpu.memory_space<smem>>
    %c4 = arith.constant 4 : index
    %4 = memref.load %arg2[%c4] : memref<12xf32, #tpu.memory_space<smem>>
    %c5 = arith.constant 5 : index
    %5 = memref.load %arg2[%c5] : memref<12xf32, #tpu.memory_space<smem>>
    %c6 = arith.constant 6 : index
    %6 = memref.load %arg2[%c6] : memref<12xf32, #tpu.memory_space<smem>>
    %c7 = arith.constant 7 : index
    %7 = memref.load %arg2[%c7] : memref<12xf32, #tpu.memory_space<smem>>
    %c8 = arith.constant 8 : index
    %8 = memref.load %arg2[%c8] : memref<12xf32, #tpu.memory_space<smem>>
    %c9 = arith.constant 9 : index
    %9 = memref.load %arg2[%c9] : memref<12xf32, #tpu.memory_space<smem>>
    %c10 = arith.constant 10 : index
    %10 = memref.load %arg2[%c10] : memref<12xf32, #tpu.memory_space<smem>>
    %c11 = arith.constant 11 : index
    %11 = memref.load %arg2[%c11] : memref<12xf32, #tpu.memory_space<smem>>
    %c0_0 = arith.constant 0 : index
    %12 = memref.load %arg3[%c0_0] : memref<3xf32, #tpu.memory_space<smem>>
    %c1_1 = arith.constant 1 : index
    %13 = memref.load %arg3[%c1_1] : memref<3xf32, #tpu.memory_space<smem>>
    %c2_2 = arith.constant 2 : index
    %14 = memref.load %arg3[%c2_2] : memref<3xf32, #tpu.memory_space<smem>>
    %c0_3 = arith.constant 0 : index
    %c0_4 = arith.constant 0 : index
    %c0_5 = arith.constant 0 : index
    %c0_6 = arith.constant 0 : index
    %15 = vector.load %arg4[%c0_3, %c0_4, %c0_5, %c0_6] : memref<1x4x2x128xf32, #tpu.memory_space<vmem>>, vector<1x1x2x128xf32>
    %16 = vector.shape_cast %15 : vector<1x1x2x128xf32> to vector<2x128xf32>
    %c0_7 = arith.constant 0 : index
    %c1_8 = arith.constant 1 : index
    %c0_9 = arith.constant 0 : index
    %c0_10 = arith.constant 0 : index
    %17 = vector.load %arg4[%c0_7, %c1_8, %c0_9, %c0_10] : memref<1x4x2x128xf32, #tpu.memory_space<vmem>>, vector<1x1x2x128xf32>
    %18 = vector.shape_cast %17 : vector<1x1x2x128xf32> to vector<2x128xf32>
    %c0_11 = arith.constant 0 : index
    %c2_12 = arith.constant 2 : index
    %c0_13 = arith.constant 0 : index
    %c0_14 = arith.constant 0 : index
    %19 = vector.load %arg4[%c0_11, %c2_12, %c0_13, %c0_14] : memref<1x4x2x128xf32, #tpu.memory_space<vmem>>, vector<1x1x2x128xf32>
    %20 = vector.shape_cast %19 : vector<1x1x2x128xf32> to vector<2x128xf32>
    %c0_15 = arith.constant 0 : index
    %c3_16 = arith.constant 3 : index
    %c0_17 = arith.constant 0 : index
    %c0_18 = arith.constant 0 : index
    %21 = vector.load %arg4[%c0_15, %c3_16, %c0_17, %c0_18] : memref<1x4x2x128xf32, #tpu.memory_space<vmem>>, vector<1x1x2x128xf32>
    %22 = vector.shape_cast %21 : vector<1x1x2x128xf32> to vector<2x128xf32>
    %23 = vector.broadcast %0 : f32 to vector<2x128xf32>
    %24 = arith.mulf %16, %23 : vector<2x128xf32>
    %25 = vector.broadcast %3 : f32 to vector<2x128xf32>
    %26 = arith.mulf %18, %25 : vector<2x128xf32>
    %27 = arith.addf %24, %26 : vector<2x128xf32>
    %28 = vector.broadcast %6 : f32 to vector<2x128xf32>
    %29 = arith.mulf %20, %28 : vector<2x128xf32>
    %30 = arith.addf %27, %29 : vector<2x128xf32>
    %31 = vector.broadcast %9 : f32 to vector<2x128xf32>
    %32 = arith.mulf %22, %31 : vector<2x128xf32>
    %33 = arith.addf %30, %32 : vector<2x128xf32>
    %34 = vector.broadcast %12 : f32 to vector<2x128xf32>
    %35 = arith.addf %33, %34 : vector<2x128xf32>
    %36 = vector.broadcast %1 : f32 to vector<2x128xf32>
    %37 = arith.mulf %16, %36 : vector<2x128xf32>
    %38 = vector.broadcast %4 : f32 to vector<2x128xf32>
    %39 = arith.mulf %18, %38 : vector<2x128xf32>
    %40 = arith.addf %37, %39 : vector<2x128xf32>
    %41 = vector.broadcast %7 : f32 to vector<2x128xf32>
    %42 = arith.mulf %20, %41 : vector<2x128xf32>
    %43 = arith.addf %40, %42 : vector<2x128xf32>
    %44 = vector.broadcast %10 : f32 to vector<2x128xf32>
    %45 = arith.mulf %22, %44 : vector<2x128xf32>
    %46 = arith.addf %43, %45 : vector<2x128xf32>
    %47 = vector.broadcast %13 : f32 to vector<2x128xf32>
    %48 = arith.addf %46, %47 : vector<2x128xf32>
    %49 = vector.broadcast %2 : f32 to vector<2x128xf32>
    %50 = arith.mulf %16, %49 : vector<2x128xf32>
    %51 = vector.broadcast %5 : f32 to vector<2x128xf32>
    %52 = arith.mulf %18, %51 : vector<2x128xf32>
    %53 = arith.addf %50, %52 : vector<2x128xf32>
    %54 = vector.broadcast %8 : f32 to vector<2x128xf32>
    %55 = arith.mulf %20, %54 : vector<2x128xf32>
    %56 = arith.addf %53, %55 : vector<2x128xf32>
    %57 = vector.broadcast %11 : f32 to vector<2x128xf32>
    %58 = arith.mulf %22, %57 : vector<2x128xf32>
    %59 = arith.addf %56, %58 : vector<2x128xf32>
    %60 = vector.broadcast %14 : f32 to vector<2x128xf32>
    %61 = arith.addf %59, %60 : vector<2x128xf32>
    %cst = arith.constant 0.000000e+00 : f32
    %62 = vector.broadcast %cst : f32 to vector<2x128xf32>
    %63 = arith.maximumf %35, %62 : vector<2x128xf32>
    %64 = arith.maximumf %63, %48 : vector<2x128xf32>
    %65 = arith.maximumf %64, %61 : vector<2x128xf32>
    %cst_19 = arith.constant 0.000000e+00 : f32
    %66 = vector.broadcast %cst_19 : f32 to vector<2x128xf32>
    %67 = arith.subf %66, %65 : vector<2x128xf32>
    %68 = math.exp %67 : vector<2x128xf32>
    %69 = arith.subf %35, %65 : vector<2x128xf32>
    %70 = math.exp %69 : vector<2x128xf32>
    %71 = arith.addf %68, %70 : vector<2x128xf32>
    %72 = arith.subf %48, %65 : vector<2x128xf32>
    %73 = math.exp %72 : vector<2x128xf32>
    %74 = arith.addf %68, %73 : vector<2x128xf32>
    %75 = arith.subf %61, %65 : vector<2x128xf32>
    %76 = math.exp %75 : vector<2x128xf32>
    %77 = arith.addf %68, %76 : vector<2x128xf32>
    %78 = arith.addf %71, %74 : vector<2x128xf32>
    %79 = arith.addf %78, %77 : vector<2x128xf32>
    %80 = tpu.reciprocal %79 {approx = true} : vector<2x128xf32> -> vector<2x128xf32>
    %81 = arith.mulf %79, %80 : vector<2x128xf32>
    %cst_20 = arith.constant 2.000000e+00 : f32
    %82 = vector.broadcast %cst_20 : f32 to vector<2x128xf32>
    %83 = arith.subf %82, %81 : vector<2x128xf32>
    %84 = arith.mulf %80, %83 : vector<2x128xf32>
    %85 = arith.mulf %71, %84 : vector<2x128xf32>
    %c0_21 = arith.constant 0 : index
    %c0_22 = arith.constant 0 : index
    %c0_23 = arith.constant 0 : index
    %c0_24 = arith.constant 0 : index
    %86 = vector.load %arg5[%c0_21, %c0_22, %c0_23, %c0_24] : memref<1x3x2x128xf32, #tpu.memory_space<vmem>>, vector<1x1x2x128xf32>
    %87 = vector.shape_cast %86 : vector<1x1x2x128xf32> to vector<2x128xf32>
    %88 = vector.shape_cast %85 : vector<2x128xf32> to vector<1x1x2x128xf32>
    tpu.vector_store %arg5[%c0_21, %c0_22, %c0_23, %c0_24], %88 {strides = array<i32>} : memref<1x3x2x128xf32, #tpu.memory_space<vmem>>, vector<1x1x2x128xf32>,
    %89 = arith.mulf %74, %84 : vector<2x128xf32>
    %c0_25 = arith.constant 0 : index
    %c1_26 = arith.constant 1 : index
    %c0_27 = arith.constant 0 : index
    %c0_28 = arith.constant 0 : index
    %90 = vector.load %arg5[%c0_25, %c1_26, %c0_27, %c0_28] : memref<1x3x2x128xf32, #tpu.memory_space<vmem>>, vector<1x1x2x128xf32>
    %91 = vector.shape_cast %90 : vector<1x1x2x128xf32> to vector<2x128xf32>
    %92 = vector.shape_cast %89 : vector<2x128xf32> to vector<1x1x2x128xf32>
    tpu.vector_store %arg5[%c0_25, %c1_26, %c0_27, %c0_28], %92 {strides = array<i32>} : memref<1x3x2x128xf32, #tpu.memory_space<vmem>>, vector<1x1x2x128xf32>,
    %93 = arith.mulf %77, %84 : vector<2x128xf32>
    %c0_29 = arith.constant 0 : index
    %c2_30 = arith.constant 2 : index
    %c0_31 = arith.constant 0 : index
    %c0_32 = arith.constant 0 : index
    %94 = vector.load %arg5[%c0_29, %c2_30, %c0_31, %c0_32] : memref<1x3x2x128xf32, #tpu.memory_space<vmem>>, vector<1x1x2x128xf32>
    %95 = vector.shape_cast %94 : vector<1x1x2x128xf32> to vector<2x128xf32>
    %96 = vector.shape_cast %93 : vector<2x128xf32> to vector<1x1x2x128xf32>
    tpu.vector_store %arg5[%c0_29, %c2_30, %c0_31, %c0_32], %96 {strides = array<i32>} : memref<1x3x2x128xf32, #tpu.memory_space<vmem>>, vector<1x1x2x128xf32>,
    return
  }
  func.func @transform_0(%arg0: i32, %arg1: i32) -> i32 {
    %c0_i32 = arith.constant 0 : i32
    %c0_i32_0 = arith.constant 0 : i32
    return %c0_i32 : i32
  }
  func.func @transform_1(%arg0: i32, %arg1: i32) -> i32 {
    %c0_i32 = arith.constant 0 : i32
    %c0_i32_0 = arith.constant 0 : i32
    return %c0_i32 : i32
  }
  func.func @transform_2(%arg0: i32, %arg1: i32) -> (i32, i32, i32, i32) {
    %c0_i32 = arith.constant 0 : i32
    %c0_i32_0 = arith.constant 0 : i32
    %c0_i32_1 = arith.constant 0 : i32
    return %arg0, %c0_i32, %arg1, %c0_i32_0 : i32, i32, i32, i32
  }
  func.func @transform_3(%arg0: i32, %arg1: i32) -> (i32, i32, i32, i32) {
    %c0_i32 = arith.constant 0 : i32
    %c0_i32_0 = arith.constant 0 : i32
    %c0_i32_1 = arith.constant 0 : i32
    return %arg0, %c0_i32, %arg1, %c0_i32_0 : i32, i32, i32, i32
  }
}

</mosaic_0001>

<bundles_post_ra>
// kernel: fdtnet_forward.1
= control target key start
LH: loop header
LB: loop body
LE: loop exit
PB: predicated region body
PF: predicated region fallthrough
CT: control target
= control target key end

     0   :  { %8 = vsyncpa [#allocation3], 0  ;;  %s696_s0 = inlined_call_operand.vmem [shape: f32[12], index: 0, kind: input, shape index: {}]   ;;  %s697_s1 = inlined_call_operand.vmem [shape: f32[3], index: 1, kind: input, shape index: {}]   ;;  %s698_s2 = inlined_call_operand.vmem [shape: f32[2,4,2,128], index: 2, kind: input, shape index: {}]   ;;  %s699_s3 = inlined_call_operand.vmem [shape: f32[2,3,2,128], index: 3, kind: output, shape index: {}]  }
   0x1   :  { %9 = vsyncpa [#allocation5], 0  ;;  %s601_s12 = smov 0   ;;  %s603_s13 = smov 0  }
   0x2   :  { %s605_s14 = smov 0  }
   0x3 LB: > { %s428_s15 = sadd.s32 4294967295, %s577_s14   ;;  %s27_s16 = sadd.s32 1, %s573_s13  ;;  %s577_s14 = sphi %s605_s14, %s15_s14   ;;  %s573_s13 = sphi %s603_s13, %s709_s13   ;;  %s569_s12 = sphi %s601_s12, %s708_s12  }
   0x4   : > { %p29_p0 = scmp.ge.s32.totalorder %s27_s16, 2  ;;  %p430_p1 = scmp.ge.s32.totalorder %s577_s14, 1 }
   0x5   : > { %p130_p2 = scmp.lt.s32.totalorder %s577_s14, 3  ;;  %p626_p4 = scmp.eq.s32.totalorder %s428_s15, 0 }
   0x6   : > { %s711_s16 = smov (%p29_p0, %s27_s16), 0  ;;  %s143_s21 = sshll.u32 %s696_s0, 4  ;;  %s144_s21 = int_to_ptr.vmem [resolvable:$true] %s143_s21 }
   0x7   : > { %p622_p3 = pnand %p430_p1, %p130_p2  ;;  %s154_s24 = sshll.u32 %s697_s1, 4  ;;  %s155_s24 = int_to_ptr.vmem [resolvable:$true] %s154_s24 }
   0x8   : > { %s704_s18 = scalar_select %p626_p4, 1, 0 }
   0x9   : > { %s703_s17 = scalar_select %p622_p3, 1, 0 }
   0xa   : > { %p470_p5 = pneg %p622_p3  ;;  %s517_s26 = scalar_lea.vmem %s144_s21, 16 }
   0xb   : > { %p518_p7 = scmp.ne.s32.totalorder %s144_s21, %s517_s26  ;;  %p525_p11 = scmp.lt.s32.totalorder %s144_s21, %s144_s21 }
   0xc   : > { %p640_p6 = pnand %p626_p4, %p470_p5  ;;  %p526_p12 = scmp.lt.s32.totalorder %s517_s26, %s517_s26 }
   0xe   : > { %p519_p8 = pneg %p640_p6  ;;  %p527_p13 = por %p526_p12, %p525_p11 }
  0x10   : > { %p520_p9 = pnand %p519_p8, %p518_p7 }
  0x12   : > { %p521_p10 = pneg %p520_p9 }
  0x14   : > { %p528_p0 = pnand %p527_p13, %p521_p10 }
  0x16   : > { %531 = shalt.err (!%p528_p0)
}
  0x17   : > { %s579_s27 = smov [#allocation2]   ;;  %s532_s28 = scalar_lea.vmem %s155_s24, 16 }
  0x18   : > { %473 = dma.vmem_to_smem (!%p640_p6), %s144_s21, 16, %s579_s27, [#allocation3]  }
  0x19   : > { %p533_p1 = scmp.ne.s32.totalorder %s155_s24, %s532_s28  ;;  %p540_p4 = scmp.lt.s32.totalorder %s155_s24, %s155_s24 }
  0x1a   : > { %p541_p3 = scmp.lt.s32.totalorder %s532_s28, %s532_s28 }
  0x1b   : > { %p535_p2 = pnand %p533_p1, %p519_p8 }
  0x1c   : > { %p542_p7 = por %p541_p3, %p540_p4 }
  0x1d   : > { %p536_p5 = pneg %p535_p2 }
  0x1f   : > { %p543_p9 = pnand %p542_p7, %p536_p5 }
  0x21   : > { %546 = shalt.err (!%p543_p9)
}
  0x22   : > { %s580_s29 = smov [#allocation4]   ;;  %p706_p10 = scmp.ne.s32.totalorder %s703_s17, 0 }
  0x23   : > { %476 = dma.vmem_to_smem (!%p640_p6), %s155_s24, 16, %s580_s29, [#allocation5]  }
  0x24   : > { %178 = sbr.rel (%p706_p10) target bundleno = 118 (0x76), region = 32  ;;  %p707_p11 = scmp.ne.s32.totalorder (!%p706_p10), %s704_s18, 0 }
  0x2b   : > { %560 = dma.done.wait (%p707_p11), [#allocation3], 16  }
  0x2c   : > { %562 = vsyncadd (%p707_p11), [#allocation3], 4294967280 }
  0x2d   : > { %564 = dma.done.wait (%p707_p11), [#allocation5], 16  }
  0x2e   : > { %566 = vsyncadd (%p707_p11), [#allocation5], 4294967280 }
  0x2f   : > { %188 = sfence }
  0x30   : > { %p213_p3 = scmp.lt.s32.totalorder %s569_s12, 1  ;;  %s229_s30 = sld [smem:[#allocation2]] }
  0x31   : > { %s440_s4 = sld [smem:[#allocation2 + $0x1]]  ;;  %s441_s5 = sld [smem:[#allocation2 + $0x2]] }
  0x32   : > { %s713_s12 = smov (!%p213_p3, %s569_s12), 1  ;;  %s442_s6 = sld [smem:[#allocation2 + $0x3]] }
  0x33   : > { %s443_s7 = sld [smem:[#allocation2 + $0x4]]  ;;  %s460_s8 = sshll.u32 %s713_s12, 3 }
  0x34   : > { %s220_s11 = scalar_lea.vmem %s698_s2, %s460_s8  ;;  %s444_s15 = sld [smem:[#allocation2 + $0x5]] }
  0x35   : > { %s445_s17 = sld [smem:[#allocation2 + $0x6]]  ;;  %v244_v0 = vld [vmem:[%s220_s11] sm:$0x3]  ;;  %s446_s18 = sld [smem:[#allocation2 + $0x7]]  ;;  %v453_v2 = vld [vmem:[%s220_s11 + $0x2] sm:$0x3] }
  0x36   : > { %v251_v1 = vstv %s229_s30  ;;  %s668_s19 = sld [smem:[#allocation2 + $0x8]]  ;;  %s448_s20 = sld [smem:[#allocation2 + $0x9]]  ;;  %v454_v9 = vld [vmem:[%s220_s11 + $0x4] sm:$0x3]  ;;  %v455_v14 = vld [vmem:[%s220_s11 + $0x6] sm:$0x3] }
  0x37   : > { %v264_v3 = vstv %s440_s4  ;;  %v277_v4 = vstv %s441_s5  ;;  %s449_s21 = sld [smem:[#allocation2 + $0xa]]  ;;  %v252_v5 = vmul.f32 %v251_v1, %v244_v0  ;;  %s670_s22 = sld [smem:[#allocation2 + $0xb]] }
  0x38   : > { %v265_v6 = vmul.f32 %v264_v3, %v244_v0  ;;  %s672_s23 = sld [smem:[#allocation4]]  ;;  %v253_v7 = vstv %s442_s6  ;;  %s674_s24 = sld [smem:[#allocation4 + $0x1]]  ;;  %v278_v12 = vmul.f32 %v277_v4, %v244_v0 }
  0x39   : > { %v266_v8 = vstv %s443_s7  ;;  %v254_v10 = vmul.f32 %v453_v2, %v253_v7  ;;  %s676_s25 = sld [smem:[#allocation4 + $0x2]]  ;;  %s461_s26 = smul.u32 6, %s713_s12 }
  0x3a   : > { %v267_v11 = vmul.f32 %v453_v2, %v266_v8  ;;  %v279_v13 = vstv %s444_s15 }
  0x3b   : > { %v255_v15 = vadd.f32 %v254_v10, %v252_v5  ;;  %v256_v16 = vstv %s445_s17  ;;  %v280_v18 = vmul.f32 %v453_v2, %v279_v13  ;;  %v269_v20 = vstv %s446_s18  ;;  %s228_s29 = scalar_lea.vmem %s699_s3, %s461_s26 }
  0x3c   : > { %v268_v17 = vadd.f32 %v267_v11, %v265_v6  ;;  %v257_v19 = vmul.f32 %v454_v9, %v256_v16  ;;  %v282_v21 = vstv %s668_s19  ;;  %v259_v22 = vstv %s448_s20 }
  0x3d   : > { %v270_v23 = vmul.f32 %v454_v9, %v269_v20  ;;  %v272_v24 = vstv %s449_s21  ;;  %v281_v25 = vadd.f32 %v280_v18, %v278_v12  ;;  %v260_v27 = vmul.f32 %v455_v14, %v259_v22 }
  0x3e   : > { %v258_v26 = vadd.f32 %v257_v19, %v255_v15  ;;  %v273_v28 = vmul.f32 %v455_v14, %v272_v24  ;;  %v262_v29 = vstv %s672_s23  ;;  %v283_v31 = vmul.f32 %v454_v9, %v282_v21 }
  0x3f   : > { %v271_v30 = vadd.f32 %v270_v23, %v268_v17  ;;  %v285_v32 = vstv %s670_s22  ;;  %v275_v34 = vstv %s674_s24  ;;  %v288_v39 = vstv %s676_s25 }
  0x40   : > { %v261_v33 = vadd.f32 %v260_v27, %v258_v26  ;;  %v286_v35 = vmul.f32 %v455_v14, %v285_v32  ;;  %v284_v37 = vadd.f32 %v283_v31, %v281_v25 }
  0x41   : > { %v274_v36 = vadd.f32 %v273_v28, %v271_v30 }
  0x42   : > { %v263_v38 = vadd.f32 %v262_v29, %v261_v33  ;;  %v287_v41 = vadd.f32 %v286_v35, %v284_v37 }
  0x43   : > { %v276_v40 = vadd.f32 %v275_v34, %v274_v36 }
  0x44   : > { %v290_v42 = vmax.f32 %v263_v38, 0.0  ;;  %v289_v43 = vadd.f32 %v288_v39, %v287_v41 }
  0x46   : > { %v291_v44 = vmax.f32 %v290_v42, %v276_v40 }
  0x48   : > { %v292_v45 = vmax.f32 %v291_v44, %v289_v43 }
  0x4a   : > { %v293_v46 = vsub.f32 0.0, %v292_v45  ;;  %v296_v47 = vsub.f32 %v263_v38, %v292_v45  ;;  %v300_v48 = vsub.f32 %v276_v40, %v292_v45  ;;  %v304_v49 = vsub.f32 %v289_v43, %v292_v45 }
  0x4c   : > { %v294_v50 = vmul.f32 1.442695, %v293_v46  ;;  %v297_v51 = vmul.f32 1.442695, %v296_v47  ;;  %v301_v52 = vmul.f32 1.442695, %v300_v48 }
  0x4d   : > { %v305_v53 = vmul.f32 1.442695, %v304_v49 }
  0x4e   : > { %507 = vpow2.f32 %v294_v50 }
  0x4f   : > { %509 = vpow2.f32 %v297_v51 }
  0x50   : > { %511 = vpow2.f32 %v301_v52 }
  0x51   : > { %513 = vpow2.f32 %v305_v53 }
  0x58   : > { %v508_v54 = vpop.eup %507 }
  0x59   : > { %v510_v55 = vpop.eup %509 }
  0x5a   : > { %v512_v56 = vpop.eup %511  ;;  %v299_v57 = vadd.f32 %v510_v55, %v508_v54 }
  0x5b   : > { %v514_v58 = vpop.eup %513  ;;  %v303_v59 = vadd.f32 %v512_v56, %v508_v54 }
  0x5c   : > { %v307_v60 = vadd.f32 %v514_v58, %v508_v54 }
  0x5d   : > { %v308_v61 = vadd.f32 %v303_v59, %v299_v57 }
  0x5f   : > { %v309_v62 = vadd.f32 %v308_v61, %v307_v60 }
  0x61   : > { %515 = vrcp.f32 %v309_v62 }
  0x6b   : > { %v516_v63 = vpop.eup %515 }
  0x6c   : > { %v311_v0 = vmul.f32 %v516_v63, %v309_v62 }
  0x6e   : > { %v312_v1 = vsub.f32 2.0, %v311_v0 }
  0x70   : > { %v313_v2 = vmul.f32 %v516_v63, %v312_v1 }
  0x72   : > { %v314_v3 = vmul.f32 %v313_v2, %v299_v57  ;;  %v316_v4 = vmul.f32 %v313_v2, %v303_v59  ;;  %v319_v5 = vmul.f32 %v313_v2, %v307_v60 }
  0x74   : > { %315 = vst [vmem:[%s228_s29] sm:$0x3] %v314_v3  ;;  %456 = vst [vmem:[%s228_s29 + $0x2] sm:$0x3] %v316_v4 }
  0x75   : > { %457 = vst [vmem:[%s228_s29 + $0x4] sm:$0x3] %v319_v5 }
  0x76 PF: > { %s15_s14 = sadd.s32 1, %s577_s14   ;;  %s708_s12 = smov %s573_s13 }
  0x77   : > { %p12_p4 = scmp.ge.s32.totalorder %s15_s14, 4   ;;  %s709_s13 = smov %s711_s16 }
  0x79   :  { %14 = sbr.rel (!%p12_p4) target bundleno = 3 (0x3), region = 76 }
  0x80   :  { %349 = vsyncpa [#allocation3], 1 }
  0x81   :  { %351 = vsyncpa [#allocation3 + $0x1], 1 }
  0x82   :  { %352 = vsyncpa [#allocation5], 1 }

</bundles_post_ra>
